<compile_context>
chip_gen: v7x
topology: tpu7x:2x2x1
jax: 0.10.0
libtpu: 0.0.40
codegen_flags: <defaults>
</compile_context>

<pallas_src>
import functools as ft

import jax
import jax.numpy as jnp
from jax.experimental import pallas as pl
from jax.experimental.pallas import tpu as pltpu


@ft.lru_cache(maxsize=None)
def _pltpu_roll_matches_numpy() -> bool:
    """One-time self-check of the hardware rotate direction.

    pltpu.roll is documented to behave like jnp.roll; this cheap cached probe
    pins the rotate-direction convention so the conv tap shifts cannot
    silently mirror the 3x3 kernel if the convention ever differs across jax
    versions.  Wrapped in ensure_compile_time_eval so it stays eager even if
    the caller is being jit-traced.
    """

    def probe(x_ref, o_ref):
        o_ref[...] = pltpu.roll(x_ref[...], 1, axis=1)

    with jax.ensure_compile_time_eval():
        x = jnp.broadcast_to(jax.lax.iota(jnp.float32, 128), (8, 128))
        y = pl.pallas_call(
            probe, out_shape=jax.ShapeDtypeStruct((8, 128), jnp.float32))(x)
        # numpy convention: roll([0..127], 1) == [127, 0, 1, ..., 126]
        return bool(y[0, 0] == 127.0)


def _conv3x3_kernel(x_ref, w_ref, b_ref, o_ref, x_all_ref, *,
                    width, roll_like_numpy):
    # x_ref:     (Bc, Cin, H*W)     flattened-spatial NCHW input chunk
    # w_ref:     (9*Cout_pad, Cin)  per-tap weights stacked on the matmul M axis
    # b_ref:     (Cout, 1)          bias
    # o_ref:     (Bc, Cout, H*W)    output chunk (lane-dense: H*W on lanes)
    # x_all_ref: (Cin, Bc*H*W)      VMEM staging: whole chunk on the lane axis
    bc, _, hw = x_ref.shape
    c_out = o_ref.shape[1]
    cout_pad = w_ref.shape[0] // 9
    height = hw // width
    lanes = bc * hw

    # Stage the chunk onto one wide lane axis (aligned 256-lane slabs, no
    # sublane relayout) so the whole chunk's channel contraction is a single
    # MXU matmul.
    for i in range(bc):
        x_all_ref[:, i * hw:(i + 1) * hw] = x_ref[i]

    w_mat = w_ref[...]                                   # (9*Cout_pad, Cin)
    bias = b_ref[...].astype(jnp.float32)                # (Cout, 1)

    # One MXU matmul for all 9 taps x all Bc images in the chunk.
    z = jnp.dot(w_mat, x_all_ref[...],
                preferred_element_type=jnp.float32)      # (9*Cout_pad, lanes)

    # Output-pixel row/col indices along the lane axis (hoisted, once/chunk).
    pix = jax.lax.broadcasted_iota(jnp.int32, (cout_pad, lanes), 1) % hw
    row = pix // width
    col = pix % width

    acc = jnp.zeros((cout_pad, lanes), jnp.float32)
    for tap in range(9):
        dh, dw = tap // 3 - 1, tap % 3 - 1
        s = dh * width + dw                              # flat source offset
        z_tap = z[tap * cout_pad:(tap + 1) * cout_pad]   # aligned (8, lanes)
        if s:
            # Spatial tap = lane rotation (XLU slot).  Any lane that wrapped
            # across a row / image / chunk boundary is exactly a lane whose
            # true tap source lies outside the image -> zeroed by the mask.
            shift = ((-s) % lanes) if roll_like_numpy else (s % lanes)
            z_tap = pltpu.roll(z_tap, shift, axis=1)
            conds = []
            if dh > 0:
                conds.append(row < height - dh)
            elif dh < 0:
                conds.append(row >= -dh)
            if dw > 0:
                conds.append(col < width - dw)
            elif dw < 0:
                conds.append(col >= -dw)
            mask = conds[0]
            for c in conds[1:]:
                mask = mask & c
            z_tap = jnp.where(mask, z_tap, 0.0)
        acc = acc + z_tap

    out = acc[:c_out] + bias                             # (Cout, lanes)
    for i in range(bc):                                  # aligned 256-lane slices
        o_ref[i] = out[:, i * hw:(i + 1) * hw].astype(o_ref.dtype)


def _pick_block_batch(b, c_in, c_out, hw, itemsize,
                      vmem_budget_bytes=8 * 1024 * 1024, max_unroll=32):
    """Images per block: big enough to amortise the ~0.35us per-step overhead,
    conservative vs. scoped VMEM (v7x-safe, counting f32 intermediates), and
    keeps the parallel grid >= 2 so both v7x TensorCores get work."""
    cout_pad = ((c_out + 7) // 8) * 8
    io_bytes = 2 * (c_in + c_out) * hw * itemsize        # double-buffered blocks
    interm_bytes = (9 + 4) * cout_pad * hw * 4           # z + rolled tmp + acc (f32)
    per_image = io_bytes + interm_bytes
    bc = max(1, min(b, vmem_budget_bytes // per_image, max_unroll))
    if b >= 2:
        bc = min(bc, max(1, b // 2))                     # grid >= 2 (megacore)
    while b % bc:                                        # grid must tile b exactly
        bc -= 1
    return bc


def conv2d_same_pallas(x_flat, w_stacked, bias_col, width):
    """3x3 'same' conv on flattened-NCHW (B, Cin, H*W) input via pallas_call."""
    b, c_in, hw = x_flat.shape
    c_out = bias_col.shape[0]
    bc = _pick_block_batch(b, c_in, c_out, hw, x_flat.dtype.itemsize)
    kernel = ft.partial(_conv3x3_kernel, width=width,
                        roll_like_numpy=_pltpu_roll_matches_numpy())
    return pl.pallas_call(
        kernel,
        out_shape=jax.ShapeDtypeStruct((b, c_out, hw), x_flat.dtype),
        grid=(b // bc,),
        in_specs=[
            pl.BlockSpec((bc, c_in, hw), lambda i: (i, 0, 0)),
            pl.BlockSpec(w_stacked.shape, lambda i: (0, 0)),
            pl.BlockSpec((c_out, 1), lambda i: (0, 0)),
        ],
        out_specs=pl.BlockSpec((bc, c_out, hw), lambda i: (i, 0, 0)),
        scratch_shapes=[pltpu.VMEM((c_in, bc * hw), x_flat.dtype)],
        compiler_params=pltpu.CompilerParams(
            dimension_semantics=("parallel",)),
    )(x_flat, w_stacked, bias_col)


def time_distributed_conv(x_tnchw, w_oihw, bias):
    """Mirror of TimeDistributed(Conv2d(Cin, Cout, 3, padding=1)).forward.

    x_tnchw: (T, N, Cin, H, W); w_oihw: (Cout, Cin, 3, 3); bias: (Cout,)
    returns: (T, N, Cout, H, W)
    """
    if x_tnchw.ndim <= 2:
        raise ValueError("Input must have more than two dimensions.")
    t, n, c_in, h, w = x_tnchw.shape
    c_out, _, kh, kw = w_oihw.shape
    assert (kh, kw) == (3, 3), "kernel implements the 3x3 'same' conv"

    # x.contiguous().view(t * n, *x.shape[2:]) with spatial flattened onto the
    # lane axis: a contiguous reshape only -- no transpose / pad in HBM.
    x_flat = x_tnchw.reshape(t * n, c_in, h * w)

    # Stack the 9 taps of the OIHW weight along the matmul M axis; zero-pad
    # Cout to a full sublane group (multiple of 8) so each per-tap slab of the
    # matmul result is an aligned (8k, lanes) block inside the kernel.
    cout_pad = ((c_out + 7) // 8) * 8
    w_taps = jnp.transpose(w_oihw, (2, 3, 0, 1)).reshape(9, c_out, c_in)
    w_stacked = (jnp.zeros((9, cout_pad, c_in), w_oihw.dtype)
                 .at[:, :c_out, :].set(w_taps)
                 .reshape(9 * cout_pad, c_in))
    bias_col = bias.reshape(c_out, 1)

    y_flat = conv2d_same_pallas(x_flat, w_stacked, bias_col, w)
    # y_reshape.contiguous().view(t, n, *y_reshape.shape[1:])
    return y_flat.reshape(t, n, c_out, h, w)


if __name__ == "__main__":
    # Small shapes consistent with the module: (time=2, batch=2, C=4, 16x16).
    T, N, C_IN, C_OUT, H, W = 2, 2, 4, 4, 16, 16

    key = jax.random.PRNGKey(0)
    kx, kw, kb = jax.random.split(key, 3)
    x = jax.random.normal(kx, (T, N, C_IN, H, W), dtype=jnp.float32)
    w_oihw = jax.random.normal(kw, (C_OUT, C_IN, 3, 3), dtype=jnp.float32) * 0.1
    bias = jax.random.normal(kb, (C_OUT,), dtype=jnp.float32) * 0.1

    y = time_distributed_conv(x, w_oihw, bias)
    y = jax.block_until_ready(y)
    assert y.shape == (T, N, C_OUT, H, W), y.shape

    # Pure-JAX reference for the same TimeDistributed(Conv2d) forward.
    x_flat = x.reshape(T * N, C_IN, H, W)
    y_ref = jax.lax.conv_general_dilated(
        x_flat, w_oihw, window_strides=(1, 1), padding="SAME",
        dimension_numbers=("NCHW", "OIHW", "NCHW"),
    ) + bias.reshape(1, C_OUT, 1, 1)
    y_ref = y_ref.reshape(T, N, C_OUT, H, W)

    assert jnp.allclose(y, y_ref, atol=1e-4, rtol=1e-4), float(
        jnp.max(jnp.abs(y - y_ref)))
    print("KERNEL_OK")
</pallas_src>

<mosaic_0001>
module attributes {stable_mosaic.version = 11 : i64} {
  func.func @probe(%arg0: memref<8x128xf32, #tpu.memory_space<vmem>>, %arg1: memref<8x128xf32, #tpu.memory_space<vmem>>) attributes {dimension_semantics = [], scalar_prefetch = 0 : i64, scratch_operands = 0 : i64, tpu.core_type = #tpu.core_type<tc>} {
    %c0 = arith.constant 0 : index
    %c0_0 = arith.constant 0 : index
    %0 = vector.load %arg0[%c0, %c0_0] : memref<8x128xf32, #tpu.memory_space<vmem>>, vector<8x128xf32>
    %c1_i32 = arith.constant 1 : i32
    %1 = tpu.dynamic_rotate %0 by %c1_i32 dim 1 : vector<8x128xf32>, i32 -> vector<8x128xf32>
    %c0_1 = arith.constant 0 : index
    %c0_2 = arith.constant 0 : index
    %2 = vector.load %arg1[%c0_1, %c0_2] : memref<8x128xf32, #tpu.memory_space<vmem>>, vector<8x128xf32>
    tpu.vector_store %arg1[%c0_1, %c0_2], %1 {strides = array<i32>} : memref<8x128xf32, #tpu.memory_space<vmem>>, vector<8x128xf32>,
    return
  }
}

</mosaic_0001>

<bundles_post_ra>
// kernel: tpu_custom_call.1
= control target key start
LH: loop header
LB: loop body
LE: loop exit
PB: predicated region body
PF: predicated region fallthrough
CT: control target
= control target key end

     0   :  { %6 = vsyncpa [#allocation3], 0  ;;  %s128_s0 = inlined_call_operand.hbm [shape: f32[8,128], index: 0, kind: input, shape index: {}]   ;;  %s129_s1 = inlined_call_operand.hbm [shape: f32[8,128], index: 1, kind: output, shape index: {}]  }
   0x1   :  { %7 = vsyncpa [#allocation4], 0  ;;  %s91_s6 = smov [#allocation2]   ;;  %s43_s10 = scalar_lea.hbm %s128_s0, 128 }
   0x2   :  { %s14_s7 = sshll.u32 %s91_s6, 4  ;;  %p44_p0 = scmp.ne.s32.totalorder %s128_s0, %s43_s10  ;;  %s15_s7 = int_to_ptr.vmem [resolvable:$true] %s14_s7 }
   0x3   :  { %p47_p1 = scmp.lt.u32.totalorder %s43_s10, %s128_s0 }
   0x5   :  { %p49_p2 = pnand %p47_p1, %p44_p0 }
   0x7   :  { %52 = shalt.err (!%p49_p2)
}
   0x8   :  { %s53_s15 = scalar_lea.vmem %s15_s7, 128  ;;  %p58_p4 = scmp.lt.s32.totalorder %s15_s7, %s15_s7 }
   0x9   :  { %p54_p3 = scmp.ne.s32.totalorder %s15_s7, %s53_s15  ;;  %p59_p5 = scmp.lt.s32.totalorder %s53_s15, %s53_s15 }
   0xb   :  { %p60_p6 = por %p59_p5, %p58_p4 }
   0xd   :  { %p61_p7 = pnand %p60_p6, %p54_p3 }
   0xf   :  { %64 = shalt.err (!%p61_p7)
}
  0x10   :  { %17 = dma.hbm_to_vmem [thread:$0]  %s128_s0, 128, %s15_s7, [#allocation3]  }
  0x11   :  { %87 = dma.done.wait [#allocation3], 128  }
  0x12   :  { %88 = vsyncadd [#allocation3], 4294967168  ;;  %v21_v0 = vld [vmem:[#allocation2] sm:$0xff]  ;;  %s92_s18 = smov 1   ;;  %s93_s19 = smov [#allocation5]  }
  0x13   :  { %22 = vrot.lane.b32.xlu0 %v21_v0, %s92_s18  ;;  %s31_s20 = sshll.u32 %s93_s19, 4  ;;  %s32_s20 = int_to_ptr.vmem [resolvable:$true] %s31_s20 }
  0x14   :  { %s65_s21 = scalar_lea.vmem %s32_s20, 128  ;;  %p70_p9 = scmp.lt.s32.totalorder %s32_s20, %s32_s20 }
  0x15   :  { %p66_p8 = scmp.ne.s32.totalorder %s32_s20, %s65_s21  ;;  %p71_p10 = scmp.lt.s32.totalorder %s65_s21, %s65_s21 }
  0x17   :  { %p72_p11 = por %p71_p10, %p70_p9 }
  0x19   :  { %p73_p12 = pnand %p72_p11, %p66_p8 }
  0x85   :  { %v23_v1 = vpop.permute.xlu0 %22 }
  0x86   :  { %24 = vst [vmem:[#allocation5] sm:$0xff] %v23_v1 }
  0x87   :  { %76 = shalt.err (!%p73_p12)
}
  0x88   :  { %s77_s0 = scalar_lea.hbm %s129_s1, 128 }
  0x89   :  { %p78_p13 = scmp.ne.s32.totalorder %s129_s1, %s77_s0  ;;  %p81_p0 = scmp.lt.u32.totalorder %s77_s0, %s129_s1 }
  0x8b   :  { %p83_p1 = pnand %p81_p0, %p78_p13 }
  0x8d   :  { %86 = shalt.err (!%p83_p1)
}
  0x8e   :  { %34 = dma.vmem_to_hbm [thread:$0]  %s32_s20, 128, %s129_s1, [#allocation4]  }
  0x8f   :  { %89 = dma.done.wait [#allocation4], 128  }
  0x90   :  { %90 = vsyncadd [#allocation4], 4294967168 }
  0x91   :  { %38 = vsyncpa [#allocation3], 1 }
  0x92   :  { %39 = vsyncpa [#allocation4], 1 }

</bundles_post_ra>
